<compile_context>
chip_gen: v5e
topology: v5e:2x2
jax: 0.10.0
libtpu: 0.0.40
codegen_flags: <defaults>
</compile_context>

<pallas_src>
import jax
import jax.numpy as jnp
from jax.experimental import pallas as pl
from jax.experimental.pallas import tpu as pltpu


def _gelu(x):
    # tanh-approx GELU; adapter_config['activation'] is unspecified in the
    # reference module, GELU chosen.
    # TODO(synk): switch to exact erf GELU if the deployed adapter config
    # uses torch.nn.GELU() with the default (erf) formulation.
    c = jnp.sqrt(2.0 / jnp.pi).astype(x.dtype)
    return 0.5 * x * (1.0 + jnp.tanh(c * (x + 0.044715 * x * x * x)))


def vit_adapter_output_kernel(
    x_ref,        # [TM, I]   hidden_states tile (MXU dtype)
    res_ref,      # [TM, H]   input_tensor tile (residual)
    wd_ref,       # [I, H]    dense weight (transposed, MXU dtype, resident)
    bd_ref,       # [1, H]    dense bias (f32, resident)
    wdn_ref,      # [H, Bp]   adapter down_project weight (padded, resident)
    bdn_ref,      # [1, Bp]   adapter down_project bias (padded, f32, resident)
    wup_ref,      # [Bp, H]   adapter up_project weight (padded, resident)
    bup_ref,      # [1, H]    adapter up_project bias (f32, resident)
    o_ref,        # [TM, H]   output tile
):
    x = x_ref[...]

    # dense: Linear(intermediate -> hidden), f32 accumulation on the MXU
    h = jnp.dot(x, wd_ref[...], preferred_element_type=jnp.float32) + bd_ref[...]

    # dropout: identity at inference time.
    # TODO(synk): training-mode dropout would need pltpu.prng_seed/prng_random_bits.

    # adapter down-project + activation (f32 accumulate, GELU in f32 on EUP)
    a = jnp.dot(h.astype(wdn_ref.dtype), wdn_ref[...],
                preferred_element_type=jnp.float32) + bdn_ref[...]
    a = _gelu(a)

    # adapter up-project
    u = jnp.dot(a.astype(wup_ref.dtype), wup_ref[...],
                preferred_element_type=jnp.float32) + bup_ref[...]

    # adapter residual + outer residual (VPU filler under the MXU)
    out = u + h + res_ref[...].astype(jnp.float32)
    o_ref[...] = out.astype(o_ref.dtype)


def vit_with_adapter_output(hidden_states, input_tensor, params,
                            *, mxu_dtype=jnp.bfloat16, tm=512):
    """hidden_states: [B, S, I]; input_tensor: [B, S, H] -> [B, S, H]."""
    B, S, I = hidden_states.shape
    H = input_tensor.shape[-1]
    M = B * S
    out_dtype = input_tensor.dtype

    # MXU operand dtype (bf16 by default for 2x MXU throughput + half the
    # HBM/VMEM traffic; pass jnp.float32 for bit-tight numerics).
    x = hidden_states.reshape(M, I).astype(mxu_dtype)
    res = input_tensor.reshape(M, H)

    wd = params["dense_w"].astype(mxu_dtype)                      # [I, H]
    bd = params["dense_b"].reshape(1, H).astype(jnp.float32)      # [1, H]

    # Pad the adapter bottleneck to a multiple of 128 lanes so both adapter
    # matmuls are full-width MXU passes.  Zero padding is exact.
    Bn = params["down_w"].shape[1]
    Bp = max(128, ((Bn + 127) // 128) * 128)
    pad = Bp - Bn
    wdn = jnp.pad(params["down_w"], ((0, 0), (0, pad))).astype(mxu_dtype)   # [H, Bp]
    bdn = jnp.pad(params["down_b"], (0, pad)).reshape(1, Bp).astype(jnp.float32)
    wup = jnp.pad(params["up_w"], ((0, pad), (0, 0))).astype(mxu_dtype)     # [Bp, H]
    bup = params["up_b"].reshape(1, H).astype(jnp.float32)

    # Token tile: big enough to amortize per-step overhead, small enough for
    # v7x's 64 MiB VMEM with double-buffering.
    TM = min(tm, M)
    grid = (pl.cdiv(M, TM),)

    # Weights / biases: constant index_map -> DMA'd once, resident in VMEM.
    resident = lambda shape: pl.BlockSpec(shape, lambda i: (0,) * len(shape))

    out = pl.pallas_call(
        vit_adapter_output_kernel,
        out_shape=jax.ShapeDtypeStruct((M, H), out_dtype),
        grid_spec=pltpu.PrefetchScalarGridSpec(
            num_scalar_prefetch=0,
            grid=grid,
            in_specs=[
                pl.BlockSpec((TM, I), lambda i: (i, 0)),   # x tile
                pl.BlockSpec((TM, H), lambda i: (i, 0)),   # residual tile
                resident((I, H)),                          # dense W
                resident((1, H)),                          # dense b
                resident((H, Bp)),                         # down W (padded)
                resident((1, Bp)),                         # down b (padded)
                resident((Bp, H)),                         # up W (padded)
                resident((1, H)),                          # up b
            ],
            out_specs=pl.BlockSpec((TM, H), lambda i: (i, 0)),
        ),
        compiler_params=pltpu.CompilerParams(
            dimension_semantics=("parallel",),             # shard M over v7x's 2 TCs
            vmem_limit_bytes=48 * 1024 * 1024,             # explicit, < v7x 64 MiB physical
        ),
    )(x, res, wd, bd, wdn, bdn, wup, bup)

    return out.reshape(B, S, H)


def make_params(key, intermediate, hidden, bottleneck, dtype=jnp.float32):
    ks = jax.random.split(key, 6)
    # ViT output dense: standard ~N(0, 0.02) init
    dense_w = jax.random.normal(ks[0], (intermediate, hidden), dtype) * 0.02
    dense_b = jax.random.normal(ks[1], (hidden,), dtype) * 0.02
    # Adapter: torch.nn.init.normal_(param, 0.0, 1e-05) on weights and biases
    down_w = jax.random.normal(ks[2], (hidden, bottleneck), dtype) * 1e-5
    down_b = jax.random.normal(ks[3], (bottleneck,), dtype) * 1e-5
    up_w = jax.random.normal(ks[4], (bottleneck, hidden), dtype) * 1e-5
    up_b = jax.random.normal(ks[5], (hidden,), dtype) * 1e-5
    return dict(
        dense_w=dense_w, dense_b=dense_b,
        down_w=down_w, down_b=down_b,
        up_w=up_w, up_b=up_b,
    )


def reference(hidden_states, input_tensor, params):
    h = jnp.einsum("bsi,ih->bsh", hidden_states, params["dense_w"]) + params["dense_b"]
    a = jnp.einsum("bsh,hk->bsk", h, params["down_w"]) + params["down_b"]
    a = _gelu(a)
    u = jnp.einsum("bsk,kh->bsh", a, params["up_w"]) + params["up_b"]
    return u + h + input_tensor


if __name__ == "__main__":
    B, S = 2, 8
    intermediate = 64   # ViT intermediate size (input of .dense)
    hidden = 32         # ViT hidden size
    bottleneck = 16     # adapter bottleneck dim

    key = jax.random.PRNGKey(0)
    k_x, k_r, k_p = jax.random.split(key, 3)

    hidden_states = jax.random.normal(k_x, (B, S, intermediate), jnp.float32)
    input_tensor = jax.random.normal(k_r, (B, S, hidden), jnp.float32)
    params = make_params(k_p, intermediate, hidden, bottleneck)

    ref = reference(hidden_states, input_tensor, params)

    # Strict check with f32 MXU operands.
    out_f32 = vit_with_adapter_output(hidden_states, input_tensor, params,
                                      mxu_dtype=jnp.float32)
    out_f32 = jax.block_until_ready(out_f32)
    assert out_f32.shape == (B, S, hidden)
    assert jnp.allclose(out_f32, ref, atol=1e-5, rtol=1e-5), "f32 mismatch vs reference"

    # Production path: bf16 MXU operands, f32 accumulation (looser tolerance).
    out_bf16 = vit_with_adapter_output(hidden_states, input_tensor, params)  # bf16 default
    out_bf16 = jax.block_until_ready(out_bf16)
    assert jnp.allclose(out_bf16, ref, atol=3e-2, rtol=3e-2), "bf16 mismatch vs reference"

    print("KERNEL_OK")
</pallas_src>

<mosaic_0001>
module attributes {stable_mosaic.version = 11 : i64} {
  func.func @vit_adapter_output_kernel(%arg0: i32, %arg1: memref<16x64xf32, #tpu.memory_space<vmem>>, %arg2: memref<16x32xf32, #tpu.memory_space<vmem>>, %arg3: memref<64x32xf32, #tpu.memory_space<vmem>>, %arg4: memref<1x32xf32, #tpu.memory_space<vmem>>, %arg5: memref<32x128xf32, #tpu.memory_space<vmem>>, %arg6: memref<1x128xf32, #tpu.memory_space<vmem>>, %arg7: memref<128x32xf32, #tpu.memory_space<vmem>>, %arg8: memref<1x32xf32, #tpu.memory_space<vmem>>, %arg9: memref<16x32xf32, #tpu.memory_space<vmem>>) attributes {dimension_semantics = [#tpu.dimension_semantics<parallel>], iteration_bounds = array<i64: 1>, scalar_prefetch = 0 : i64, scratch_operands = 0 : i64, tpu.core_type = #tpu.core_type<tc>, window_params = [{transform_indices = @transform_0, window_bounds = array<i64: 16, 64>}, {transform_indices = @transform_1, window_bounds = array<i64: 16, 32>}, {pipeline_mode = #tpu.pipeline_mode<synchronous>, transform_indices = @transform_2, window_bounds = array<i64: 64, 32>}, {pipeline_mode = #tpu.pipeline_mode<synchronous>, transform_indices = @transform_3, window_bounds = array<i64: 1, 32>}, {pipeline_mode = #tpu.pipeline_mode<synchronous>, transform_indices = @transform_4, window_bounds = array<i64: 32, 128>}, {pipeline_mode = #tpu.pipeline_mode<synchronous>, transform_indices = @transform_5, window_bounds = array<i64: 1, 128>}, {pipeline_mode = #tpu.pipeline_mode<synchronous>, transform_indices = @transform_6, window_bounds = array<i64: 128, 32>}, {pipeline_mode = #tpu.pipeline_mode<synchronous>, transform_indices = @transform_7, window_bounds = array<i64: 1, 32>}, {transform_indices = @transform_8, window_bounds = array<i64: 16, 32>}]} {
    %c0 = arith.constant 0 : index
    %c0_0 = arith.constant 0 : index
    %0 = vector.load %arg1[%c0, %c0_0] : memref<16x64xf32, #tpu.memory_space<vmem>>, vector<16x64xf32>
    %c0_1 = arith.constant 0 : index
    %c0_2 = arith.constant 0 : index
    %1 = vector.load %arg3[%c0_1, %c0_2] : memref<64x32xf32, #tpu.memory_space<vmem>>, vector<64x32xf32>
    %cst = arith.constant dense<0.000000e+00> : vector<16x32xf32>
    %2 = tpu.matmul %0, %1, %cst {dimension_numbers = #tpu.dot_dimension_numbers<[1], [0], [0], [1], [0, 0, 1, 1], [], []>} : vector<16x64xf32>, vector<64x32xf32>, vector<16x32xf32> -> vector<16x32xf32>
    %c0_3 = arith.constant 0 : index
    %c0_4 = arith.constant 0 : index
    %3 = vector.load %arg4[%c0_3, %c0_4] : memref<1x32xf32, #tpu.memory_space<vmem>>, vector<1x32xf32>
    %4 = vector.broadcast %3 : vector<1x32xf32> to vector<16x32xf32>
    %5 = arith.addf %2, %4 : vector<16x32xf32>
    %c0_5 = arith.constant 0 : index
    %c0_6 = arith.constant 0 : index
    %6 = vector.load %arg5[%c0_5, %c0_6] : memref<32x128xf32, #tpu.memory_space<vmem>>, vector<32x128xf32>
    %cst_7 = arith.constant dense<0.000000e+00> : vector<16x128xf32>
    %7 = tpu.matmul %5, %6, %cst_7 {dimension_numbers = #tpu.dot_dimension_numbers<[1], [0], [0], [1], [0, 0, 1, 1], [], []>} : vector<16x32xf32>, vector<32x128xf32>, vector<16x128xf32> -> vector<16x128xf32>
    %c0_8 = arith.constant 0 : index
    %c0_9 = arith.constant 0 : index
    %8 = vector.load %arg6[%c0_8, %c0_9] : memref<1x128xf32, #tpu.memory_space<vmem>>, vector<1x128xf32>
    %9 = vector.broadcast %8 : vector<1x128xf32> to vector<16x128xf32>
    %10 = arith.addf %7, %9 : vector<16x128xf32>
    %cst_10 = arith.constant 0.636619746 : f32
    %11 = math.sqrt %cst_10 : f32
    %cst_11 = arith.constant 5.000000e-01 : f32
    %12 = vector.broadcast %cst_11 : f32 to vector<16x128xf32>
    %13 = arith.mulf %12, %10 : vector<16x128xf32>
    %cst_12 = arith.constant 4.471500e-02 : f32
    %14 = vector.broadcast %cst_12 : f32 to vector<16x128xf32>
    %15 = arith.mulf %14, %10 : vector<16x128xf32>
    %16 = arith.mulf %15, %10 : vector<16x128xf32>
    %17 = arith.mulf %16, %10 : vector<16x128xf32>
    %18 = arith.addf %10, %17 : vector<16x128xf32>
    %19 = vector.broadcast %11 : f32 to vector<16x128xf32>
    %20 = arith.mulf %19, %18 : vector<16x128xf32>
    %21 = math.tanh %20 : vector<16x128xf32>
    %cst_13 = arith.constant 1.000000e+00 : f32
    %22 = vector.broadcast %cst_13 : f32 to vector<16x128xf32>
    %23 = arith.addf %22, %21 : vector<16x128xf32>
    %24 = arith.mulf %13, %23 : vector<16x128xf32>
    %c0_14 = arith.constant 0 : index
    %c0_15 = arith.constant 0 : index
    %25 = vector.load %arg7[%c0_14, %c0_15] : memref<128x32xf32, #tpu.memory_space<vmem>>, vector<128x32xf32>
    %cst_16 = arith.constant dense<0.000000e+00> : vector<16x32xf32>
    %26 = tpu.matmul %24, %25, %cst_16 {dimension_numbers = #tpu.dot_dimension_numbers<[1], [0], [0], [1], [0, 0, 1, 1], [], []>} : vector<16x128xf32>, vector<128x32xf32>, vector<16x32xf32> -> vector<16x32xf32>
    %c0_17 = arith.constant 0 : index
    %c0_18 = arith.constant 0 : index
    %27 = vector.load %arg8[%c0_17, %c0_18] : memref<1x32xf32, #tpu.memory_space<vmem>>, vector<1x32xf32>
    %28 = vector.broadcast %27 : vector<1x32xf32> to vector<16x32xf32>
    %29 = arith.addf %26, %28 : vector<16x32xf32>
    %30 = arith.addf %29, %5 : vector<16x32xf32>
    %c0_19 = arith.constant 0 : index
    %c0_20 = arith.constant 0 : index
    %31 = vector.load %arg2[%c0_19, %c0_20] : memref<16x32xf32, #tpu.memory_space<vmem>>, vector<16x32xf32>
    %32 = arith.addf %30, %31 : vector<16x32xf32>
    %c0_21 = arith.constant 0 : index
    %c0_22 = arith.constant 0 : index
    %33 = vector.load %arg9[%c0_21, %c0_22] : memref<16x32xf32, #tpu.memory_space<vmem>>, vector<16x32xf32>
    tpu.vector_store %arg9[%c0_21, %c0_22], %32 {strides = array<i32>} : memref<16x32xf32, #tpu.memory_space<vmem>>, vector<16x32xf32>,
    return
  }
  func.func @transform_0(%arg0: i32) -> (i32, i32) {
    %c0_i32 = arith.constant 0 : i32
    %c0_i32_0 = arith.constant 0 : i32
    return %arg0, %c0_i32 : i32, i32
  }
  func.func @transform_1(%arg0: i32) -> (i32, i32) {
    %c0_i32 = arith.constant 0 : i32
    %c0_i32_0 = arith.constant 0 : i32
    return %arg0, %c0_i32 : i32, i32
  }
  func.func @transform_2(%arg0: i32) -> (i32, i32) {
    %c0_i32 = arith.constant 0 : i32
    %c0_i32_0 = arith.constant 0 : i32
    %c0_i32_1 = arith.constant 0 : i32
    return %c0_i32, %c0_i32_0 : i32, i32
  }
  func.func @transform_3(%arg0: i32) -> (i32, i32) {
    %c0_i32 = arith.constant 0 : i32
    %c0_i32_0 = arith.constant 0 : i32
    %c0_i32_1 = arith.constant 0 : i32
    return %c0_i32, %c0_i32_0 : i32, i32
  }
  func.func @transform_4(%arg0: i32) -> (i32, i32) {
    %c0_i32 = arith.constant 0 : i32
    %c0_i32_0 = arith.constant 0 : i32
    %c0_i32_1 = arith.constant 0 : i32
    return %c0_i32, %c0_i32_0 : i32, i32
  }
  func.func @transform_5(%arg0: i32) -> (i32, i32) {
    %c0_i32 = arith.constant 0 : i32
    %c0_i32_0 = arith.constant 0 : i32
    %c0_i32_1 = arith.constant 0 : i32
    return %c0_i32, %c0_i32_0 : i32, i32
  }
  func.func @transform_6(%arg0: i32) -> (i32, i32) {
    %c0_i32 = arith.constant 0 : i32
    %c0_i32_0 = arith.constant 0 : i32
    %c0_i32_1 = arith.constant 0 : i32
    return %c0_i32, %c0_i32_0 : i32, i32
  }
  func.func @transform_7(%arg0: i32) -> (i32, i32) {
    %c0_i32 = arith.constant 0 : i32
    %c0_i32_0 = arith.constant 0 : i32
    %c0_i32_1 = arith.constant 0 : i32
    return %c0_i32, %c0_i32_0 : i32, i32
  }
  func.func @transform_8(%arg0: i32) -> (i32, i32) {
    %c0_i32 = arith.constant 0 : i32
    %c0_i32_0 = arith.constant 0 : i32
    return %arg0, %c0_i32 : i32, i32
  }
}

</mosaic_0001>

<bundles_post_ra>
// kernel: tpu_custom_call.1
= control target key start
LH: loop header
LB: loop body
LE: loop exit
PB: predicated region body
PF: predicated region fallthrough
CT: control target
= control target key end

     0   :  { %s423_s0 = inlined_call_operand.vmem [shape: f32[16,64], index: 0, kind: input, shape index: {}]   ;;  %s424_s1 = inlined_call_operand.vmem [shape: f32[16,32], index: 1, kind: input, shape index: {}]   ;;  %s425_s2 = inlined_call_operand.vmem [shape: f32[64,32], index: 2, kind: input, shape index: {}]   ;;  %s426_s3 = inlined_call_operand.vmem [shape: f32[1,32], index: 3, kind: input, shape index: {}]   ;;  %s427_s4 = inlined_call_operand.vmem [shape: f32[32,128], index: 4, kind: input, shape index: {}]   ;;  %s428_s5 = inlined_call_operand.vmem [shape: f32[1,128], index: 5, kind: input, shape index: {}]   ;;  %s429_s6 = inlined_call_operand.vmem [shape: f32[128,32], index: 6, kind: input, shape index: {}]   ;;  %s430_s7 = inlined_call_operand.vmem [shape: f32[1,32], index: 7, kind: input, shape index: {}]   ;;  %s431_s8 = inlined_call_operand.hbm [shape: f32[16,32], index: 8, kind: output, shape index: {}]  }
   0x1   :  { %v39_v0 = vld [vmem:[%s425_s2 + $0x38] sm:$0xff]  ;;  %v38_v1 = vld [vmem:[%s425_s2 + $0x30] sm:$0xff]  ;;  %v37_v2 = vld [vmem:[%s425_s2 + $0x28] sm:$0xff] }
   0x2   :  { %59 = vmatpush.msra.mxu0 %v39_v0  ;;  %v77_v3 = vld [vmem:[%s427_s4 + $0x18] sm:$0xff]  ;;  %v76_v4 = vld [vmem:[%s427_s4 + $0x10] sm:$0xff]  ;;  %v36_v5 = vld [vmem:[%s425_s2 + $0x20] sm:$0xff] }
   0x3   :  { %101 = vmatpush.msra.mxu1 %v77_v3 }
   0x4   :  { %60 = vmatpush.msra.mxu0 %v38_v1 }
   0x6   :  { %61 = vmatpush.msra.mxu0 %v37_v2 }
   0x7   :  { %13 = vsyncpa [#allocation3], 0  ;;  %v35_v6 = vld [vmem:[%s425_s2 + $0x18] sm:$0xff]  ;;  %102 = vmatpush.msra.mxu1 %v76_v4  ;;  %v34_v7 = vld [vmem:[%s425_s2 + $0x10] sm:$0xff]  ;;  %vm44_vm0 = vcmask 523264   ;;  %vm82_vm1 = vcmask 261120  }
   0x8   :  { %62 = vmatpush.msra.mxu0 %v36_v5  ;;  %v33_v8 = vld [vmem:[%s425_s2 + $0x8] sm:$0xff]  ;;  %v32_v9 = vld [vmem:[%s425_s2] sm:$0xff]  ;;  %v145_v14 = vld [vmem:[%s429_s6 + $0x78] sm:$0xff]  ;;  %s255_s20 = smov [#allocation2]   ;;  %s187_s23 = sshll.u32 %s431_s8, 4  ;;  %s188_s23 = int_to_ptr.hbm [resolvable:$true] %s187_s23 }
   0x9   :  { %v30_v10 = vld [vmem:[%s423_s0] sm:$0xff]  ;;  %v31_v11 = vld [vmem:[%s423_s0 + $0x8] sm:$0xff]  ;;  %v144_v15 = vld [vmem:[%s429_s6 + $0x70] sm:$0xff]  ;;  %150 = vmatpush.msra.mxu2 %v145_v14  ;;  %203 = vmatpush.msra.mxu3 %v145_v14  ;;  %s256_s25 = smov 128   ;;  %s257_s26 = smov 8  }
   0xa   :  { %63 = vmatpush.msra.mxu0 %v35_v6  ;;  %v75_v12 = vld [vmem:[%s427_s4 + $0x8] sm:$0xff]  ;;  %v74_v13 = vld [vmem:[%s427_s4] sm:$0xff]  ;;  %v141_v23 = vld [vmem:[%s429_s6 + $0x58] sm:$0xff] }
   0xb   :  { %103 = vmatpush.msra.mxu1 %v75_v12  ;;  %v143_v16 = vld [vmem:[%s429_s6 + $0x68] sm:$0xff]  ;;  %151 = vmatpush.msra.mxu2 %v144_v15  ;;  %v142_v17 = vld [vmem:[%s429_s6 + $0x60] sm:$0xff]  ;;  %v140_v24 = vld [vmem:[%s429_s6 + $0x50] sm:$0xff] }
   0xc   :  { %64 = vmatpush.msra.mxu0 %v34_v7  ;;  %204 = vmatpush.msra.mxu3 %v144_v15  ;;  %v222_v18 = vld [vmem:[%s426_s3] ss:$0 sm:$0xff]  ;;  %v139_v25 = vld [vmem:[%s429_s6 + $0x48] sm:$0xff]  ;;  %v137_v27 = vld [vmem:[%s429_s6 + $0x38] sm:$0xff]  ;;  %s185_s3 = sshll.u32 %s255_s20, 4  ;;  %s186_s3 = int_to_ptr.vmem [resolvable:$true] %s185_s3 }
   0xd   :  { %104 = vmatpush.msra.mxu1 %v74_v13  ;;  %152 = vmatpush.msra.mxu2 %v143_v16  ;;  %v138_v26 = vld [vmem:[%s429_s6 + $0x40] sm:$0xff]  ;;  %v136_v28 = vld [vmem:[%s429_s6 + $0x30] sm:$0xff]  ;;  %v135_v29 = vld [vmem:[%s429_s6 + $0x28] sm:$0xff] }
   0xe   :  { %65 = vmatpush.msra.mxu0 %v33_v8  ;;  %205 = vmatpush.msra.mxu3 %v143_v16  ;;  %v134_v30 = vld [vmem:[%s429_s6 + $0x20] sm:$0xff]  ;;  %v133_v31 = vld [vmem:[%s429_s6 + $0x18] sm:$0xff]  ;;  %v132_v32 = vld [vmem:[%s429_s6 + $0x10] sm:$0xff] }
   0xf   :  { %153 = vmatpush.msra.mxu2 %v142_v17  ;;  %v131_v33 = vld [vmem:[%s429_s6 + $0x8] sm:$0xff]  ;;  %v130_v34 = vld [vmem:[%s429_s6] sm:$0xff] }
  0x10   :  { %66 = vmatpush.msra.mxu0 %v32_v9  ;;  %206 = vmatpush.msra.mxu3 %v142_v17  ;;  %v223_v35 = vld [vmem:[%s428_s5] ss:$0 sm:$0xff]  ;;  %v176_v2 = vld [vmem:[%s424_s1 + $0x8] sm:$0xff] }
  0x11   :  { %199 = vmatmul.msk.f32.vlgmr.msra.gmra.mxu0 %vm44_vm0, %v30_v10  ;;  %154 = vmatpush.msra.mxu2 %v141_v23  ;;  %v224_v58 = vld [vmem:[%s430_s7] ss:$0 sm:$0xff] }
  0x12   :  { %207 = vmatpush.msra.mxu3 %v141_v23  ;;  %v175_v61 = vld [vmem:[%s424_s1] sm:$0xff] }
  0x13   :  { %155 = vmatpush.msra.mxu2 %v140_v24 }
  0x14   :  { %208 = vmatpush.msra.mxu3 %v140_v24 }
  0x15   :  { %156 = vmatpush.msra.mxu2 %v139_v25 }
  0x16   :  { %209 = vmatpush.msra.mxu3 %v139_v25 }
  0x17   :  { %157 = vmatpush.msra.mxu2 %v138_v26 }
  0x18   :  { %210 = vmatpush.msra.mxu3 %v138_v26 }
  0x19   :  { %200 = vmatmul.msk.f32.gmra.mxu0 %vm44_vm0, %v31_v11  ;;  %158 = vmatpush.msra.mxu2 %v137_v27 }
  0x1a   :  { %211 = vmatpush.msra.mxu3 %v137_v27 }
  0x1b   :  { %159 = vmatpush.msra.mxu2 %v136_v28 }
  0x1c   :  { %212 = vmatpush.msra.mxu3 %v136_v28 }
  0x1d   :  { %160 = vmatpush.msra.mxu2 %v135_v29 }
  0x1e   :  { %213 = vmatpush.msra.mxu3 %v135_v29 }
  0x1f   :  { %161 = vmatpush.msra.mxu2 %v134_v30 }
  0x20   :  { %214 = vmatpush.msra.mxu3 %v134_v30 }
  0x21   :  { %162 = vmatpush.msra.mxu2 %v133_v31 }
  0x22   :  { %215 = vmatpush.msra.mxu3 %v133_v31 }
  0x23   :  { %163 = vmatpush.msra.mxu2 %v132_v32 }
  0x24   :  { %216 = vmatpush.msra.mxu3 %v132_v32 }
  0x25   :  { %164 = vmatpush.msra.mxu2 %v131_v33 }
  0x26   :  { %217 = vmatpush.msra.mxu3 %v131_v33 }
  0x27   :  { %165 = vmatpush.msra.mxu2 %v130_v34 }
  0x28   :  { %218 = vmatpush.msra.mxu3 %v130_v34 }
  0x8e   :  { %v68_v19 = vpop.f32.mrf.mxu0 }
  0x8f   :  { %v360_v20 = vadd.f32 %v222_v18, %v68_v19 }
  0x91   :  { %201 = vmatmul.msk.f32.vlgmr.msra.gmra.mxu1 %vm82_vm1, %v360_v20 }
  0x96   :  { %v71_v21 = vpop.f32.mrf.mxu0 }
  0x97   :  { %v364_v22 = vadd.f32 %v222_v18, %v71_v21 }
  0x99   :  { %202 = vmatmul.msk.f32.gmra.mxu1 %vm82_vm1, %v364_v22 }
 0x10e   :  { %v106_v36 = vpop.f32.mrf.mxu1 }
 0x10f   :  { %v107_v37 = vadd.f32 %v223_v35, %v106_v36 }
 0x111   :  { %v114_v38 = vmul.f32 0.044715, %v107_v37  ;;  %v112_v51 = vmul.f32 0.5, %v107_v37 }
 0x113   :  { %v116_v39 = vmul.f32 %v114_v38, %v107_v37 }
 0x115   :  { %v118_v40 = vmul.f32 %v116_v39, %v107_v37 }
 0x116   :  { %v109_v41 = vpop.f32.mrf.mxu1 }
 0x117   :  { %v110_v42 = vadd.f32 %v223_v35, %v109_v41  ;;  %v120_v43 = vadd.f32 %v118_v40, %v107_v37 }
 0x119   :  { %v122_v44 = vmul.f32 0.7978845, %v120_v43  ;;  %v115_v45 = vmul.f32 0.044715, %v110_v42  ;;  %v113_v55 = vmul.f32 0.5, %v110_v42 }
 0x11b   :  { %225 = vtanh.f32 %v122_v44  ;;  %v117_v46 = vmul.f32 %v115_v45, %v110_v42 }
 0x11d   :  { %v119_v47 = vmul.f32 %v117_v46, %v110_v42 }
 0x11f   :  { %v121_v48 = vadd.f32 %v119_v47, %v110_v42 }
 0x121   :  { %v226_v49 = vpop.eup %225  ;;  %v123_v50 = vmul.f32 0.7978845, %v121_v48 }
 0x122   :  { %v126_v52 = vadd.f32 1.0, %v226_v49 }
 0x123   :  { %227 = vtanh.f32 %v123_v50 }
 0x124   :  { %v128_v53 = vmul.f32 %v126_v52, %v112_v51 }
 0x126   :  { %166 = vmatmul.f32.vlgmr.msra.gmra.mxu2 %v128_v53 }
 0x129   :  { %v228_v54 = vpop.eup %227 }
 0x12a   :  { %v127_v56 = vadd.f32 1.0, %v228_v54 }
 0x12c   :  { %v129_v57 = vmul.f32 %v127_v56, %v113_v55 }
 0x12e   :  { %169 = vmatmul.f32.vlgmr.msra.gmra.mxu3 %v129_v57 }
 0x1a9   :  { %v167_v59 = vpop.f32.mrf.mxu2 }
 0x1aa   :  { %v168_v60 = vadd.f32 %v224_v58, %v167_v59 }
 0x1ac   :  { %v173_v62 = vadd.f32 %v168_v60, %v360_v20 }
 0x1ae   :  { %v177_v63 = vadd.f32 %v175_v61, %v173_v62 }
 0x1b0   :  { %179 = vst.msk [vmem:[#allocation2] sm:$0xff] %vm82_vm1, %v177_v63 }
 0x1b1   :  { %v170_v0 = vpop.f32.mrf.mxu3 }
 0x1b2   :  { %v171_v1 = vadd.f32 %v224_v58, %v170_v0 }
 0x1b4   :  { %v174_v3 = vadd.f32 %v171_v1, %v364_v22 }
 0x1b6   :  { %v178_v4 = vadd.f32 %v176_v2, %v174_v3 }
 0x1b8   :  { %180 = vst.msk [vmem:[#allocation2 + $0x8] sm:$0xff] %vm82_vm1, %v178_v4 }
 0x1b9   :  { %193 = dma.vmem_to_hbm [thread:$0]  %s186_s3, 256, %s188_s23, [#allocation3], %s256_s25, %s256_s25, %s257_s26  }
 0x1ba   :  { %253 = dma.done.wait [#allocation3], 256  }
 0x1bb   :  { %254 = vsyncadd [#allocation3], 4294967040 }
 0x1bc   :  { %198 = vsyncpa [#allocation3], 1 }

</bundles_post_ra>
